<compile_context>
chip_gen: v7x
topology: tpu7x:2x2x1
jax: 0.10.0
libtpu: 0.0.40
codegen_flags: <defaults>
</compile_context>

<pallas_src>
import jax
import jax.numpy as jnp
from jax.experimental import pallas as pl
from jax.experimental.pallas import tpu as pltpu


def _round_up(a, m):
    return (a + m - 1) // m * m


def _cdiv(a, b):
    return (a + b - 1) // b


def _vmem_capacity_bytes():
    try:
        info = pltpu.get_tpu_info()
        cap = getattr(info, "vmem_capacity_bytes", None)
        if cap:
            return int(cap)
    except Exception:
        pass
    return 64 * 1024 * 1024  # conservative default (v7x per-core VMEM)


def _make_kernel(K, d_tile, H, carry_halo):
    """Depthwise causal conv over one (row_tile, d_tile) block.

    prev_ref (VMEM scratch, (row_tile, H), input dtype) carries the last H lanes
    of the previous D tile of this row block (H = round_up(K-1, 128) >= K-1), so
    the first K-1 outputs of every interior D tile see the correct causal
    history.  Requires d_tile >= H (enforced by the wrapper).
    """
    assert d_tile >= H and d_tile % 128 == 0 and H % 128 == 0

    def kernel(x_ref, w_ref, b_ref, o_ref, prev_ref):
        d_idx = pl.program_id(1)

        # Start of a row block's D sweep: the causal halo is zeros (front pad).
        @pl.when(d_idx == 0)
        def _():
            prev_ref[...] = jnp.zeros_like(prev_ref)

        xr = x_ref[...]                              # (Rt, Dt) native dtype
        xv = xr.astype(jnp.float32)
        wv = w_ref[...].astype(jnp.float32)          # (Rt, K) per-row taps
        bv = b_ref[...].astype(jnp.float32)          # (Rt, 1)
        pv = prev_ref[...].astype(jnp.float32)       # (Rt, H) causal halo

        w0 = wv[:, K - 1:K]                          # zero-shift (aligned) tap

        # ---- head: lanes [0, H). Recomputed exactly with the halo spliced in
        #      via one narrow select per tap (rolls run on the XLU). -----------
        rt = pv.shape[0]
        head = xv[:, :H]                             # aligned lane slice
        lane = jax.lax.broadcasted_iota(jnp.int32, (rt, H), 1)  # hoisted once
        acc_head = head * w0 + bv
        for s in range(1, K):                        # tap k = K-1-s, shift s
            cur = pltpu.roll(head, shift=s, axis=1)  # x[j-s]      for j >= s
            prv = pltpu.roll(pv, shift=s, axis=1)    # prev[H-s+j] for j <  s
            acc_head = acc_head + wv[:, K - 1 - s:K - s] * jnp.where(
                lane < s, prv, cur)

        if d_tile == H:
            o_ref[...] = acc_head.astype(o_ref.dtype)
        else:
            # ---- tail: lanes [H, Dt). A plain roll never wraps into these
            #      lanes (H >= K-1 >= s), so no masks are needed; the first H
            #      lanes of `acc` are wrong but are overwritten just below. ----
            acc = xv * w0 + bv
            for s in range(1, K):
                acc = acc + wv[:, K - 1 - s:K - s] * pltpu.roll(xv, shift=s, axis=1)
            o_ref[...] = acc.astype(o_ref.dtype)
            o_ref[:, :H] = acc_head.astype(o_ref.dtype)  # aligned 128-lane store

        if carry_halo:
            # Carry the last H input lanes forward (native dtype, aligned slice).
            prev_ref[...] = xr[:, d_tile - H:]

    return kernel


def linear_ext_forward(x, weight, bias, kernel_size):
    """x: (B, C, D); weight: (C, K); bias: (C,).  Returns (B, C, D)."""
    B, C, D = x.shape
    K = int(kernel_size)
    R = B * C
    itemsize = jnp.dtype(x.dtype).itemsize

    # Generation-aware tile caps / scoped-VMEM limit.
    vmem_cap = _vmem_capacity_bytes()
    if vmem_cap >= 100 * 1024 * 1024:        # v5e / v6e (128 MiB VMEM)
        r_cap, d_cap = 512, 2048
    else:                                    # v7x (64 MiB per TensorCore)
        r_cap, d_cap = 256, 1024

    # Sublane packing: 8 rows for 32-bit, 16 for bf16, 32 for int8/fp8.
    sub = 8 * max(1, 4 // max(1, itemsize))
    # Halo width: whole 128-lane blocks covering the K-1 causal taps.
    H = max(128, _round_up(K - 1, 128))

    # Rows: pad to a sublane multiple; split into >= 2 row blocks when possible
    # so the "parallel" grid axis can span both TensorCores on v7x.
    R1 = _round_up(R, sub)
    row_tile = min(r_cap, max(sub, _round_up(_cdiv(R1, 2), sub)))
    nr = _cdiv(R1, row_tile)

    # Lanes: pad D to a multiple of 128 (and to >= H) so stores are full-lane and
    # the aligned halo slice exists; right-padding is causal-safe (sliced off).
    D1 = max(_round_up(D, 128), H)
    d_tile = min(max(d_cap, H), D1)
    nd = _cdiv(D1, d_tile)
    assert d_tile >= H and d_tile % 128 == 0

    # Lane-dense 2-D views (+ zero padding only when the shape needs it).
    x2 = x.reshape(R, D)
    w2 = jnp.broadcast_to(weight[None, :, :], (B, C, K)).reshape(R, K)
    b2 = jnp.broadcast_to(bias[None, :, None], (B, C, 1)).reshape(R, 1)
    if R1 != R or D1 != D:
        x2 = jnp.pad(x2, ((0, R1 - R), (0, D1 - D)))
    if R1 != R:
        w2 = jnp.pad(w2, ((0, R1 - R), (0, 0)))
        b2 = jnp.pad(b2, ((0, R1 - R), (0, 0)))

    cost = pl.CostEstimate(
        flops=2 * R * D * K,
        transcendentals=0,
        bytes_accessed=2 * R * D * itemsize + R * (K + 1) * itemsize,
    )

    # VMEM budget: in/out double-buffered tiles + f32 temporaries + halo, with
    # headroom, capped at half the physical arena (<= 32 MiB on v7x).
    tile_in = row_tile * d_tile * itemsize
    tile_f32 = row_tile * d_tile * 4
    need = 4 * tile_in + 6 * tile_f32 + row_tile * H * (itemsize + 4)
    vmem_limit = int(min(vmem_cap // 2, max(32 * 1024 * 1024, 2 * need)))

    out2 = pl.pallas_call(
        _make_kernel(K, d_tile, H, carry_halo=(nd > 1)),
        out_shape=jax.ShapeDtypeStruct((R1, D1), x.dtype),
        grid_spec=pltpu.PrefetchScalarGridSpec(
            num_scalar_prefetch=0,
            grid=(nr, nd),
            in_specs=[
                pl.BlockSpec((row_tile, d_tile), lambda r, d: (r, d)),  # x tile
                pl.BlockSpec((row_tile, K), lambda r, d: (r, 0)),       # taps
                pl.BlockSpec((row_tile, 1), lambda r, d: (r, 0)),       # bias
            ],
            out_specs=pl.BlockSpec((row_tile, d_tile), lambda r, d: (r, d)),
            scratch_shapes=[pltpu.VMEM((row_tile, H), x.dtype)],        # halo
        ),
        compiler_params=pltpu.CompilerParams(
            # NOTE: the D axis carries the halo scratch and MUST stay sequential
            # ("arbitrary"); only the row axis may be parallelised across cores.
            dimension_semantics=("parallel", "arbitrary"),
            vmem_limit_bytes=vmem_limit,
        ),
        cost_estimate=cost,
    )(x2, w2, b2)

    return out2[:R, :D].reshape(B, C, D)


def _reference(x, weight, bias, K):
    # Pure-JAX reference mirroring the PyTorch module: front zero-pad + depthwise
    # conv + bias (Dropout(p=0) is the identity).
    B, C, D = x.shape
    xp = jnp.concatenate([jnp.zeros((B, C, K - 1), x.dtype), x], axis=-1)
    out = jnp.zeros((B, C, D), jnp.float32)
    for k in range(K):
        out = out + (weight[None, :, k:k + 1].astype(jnp.float32)
                     * xp[:, :, k:k + D].astype(jnp.float32))
    return out + bias[None, :, None].astype(jnp.float32)


if __name__ == "__main__":
    def check(B, C, D, K, random_params=False, seed=0):
        keys = jax.random.split(jax.random.PRNGKey(seed), 3)
        x = jax.random.normal(keys[0], (B, C, D), dtype=jnp.float32)
        if random_params:
            weight = jax.random.normal(keys[1], (C, K), dtype=jnp.float32)
            bias = jax.random.normal(keys[2], (C,), dtype=jnp.float32)
        else:
            # Init matching Linear_ext.__init__: weight = softmax(ones) = 1/K; bias = 0.
            weight = jax.nn.softmax(jnp.ones((C, K), jnp.float32), axis=-1)
            bias = jnp.zeros((C,), jnp.float32)
        out = jax.block_until_ready(linear_ext_forward(x, weight, bias, K))
        ref = _reference(x, weight, bias, K)
        assert out.shape == (B, C, D)
        assert jnp.allclose(out, ref.astype(out.dtype), atol=1e-5, rtol=1e-5), (B, C, D, K)

    # Small shapes consistent with the module (channel=4, seq D=16, kernel_size=8).
    check(2, 4, 16, 8)
    # Multi-D-tile path: exercises the carried causal halo on every TPU generation.
    check(2, 8, 4096, 8)
    # Unaligned shapes: odd channel count and D % 128 != 0 -> wrapper pad + slice.
    check(2, 7, 336, 8)
    # Non-uniform taps / non-zero bias: exercises per-tap weight-column mapping.
    check(2, 4, 256, 8, random_params=True, seed=1)

    print("KERNEL_OK")
</pallas_src>

<mosaic_0001>
module attributes {stable_mosaic.version = 11 : i64} {
  func.func @kernel(%arg0: i32, %arg1: i32, %arg2: memref<8x128xf32, #tpu.memory_space<vmem>>, %arg3: memref<8x8xf32, #tpu.memory_space<vmem>>, %arg4: memref<8x1xf32, #tpu.memory_space<vmem>>, %arg5: memref<8x128xf32, #tpu.memory_space<vmem>>, %arg6: memref<8x128xf32, #tpu.memory_space<vmem>>) attributes {dimension_semantics = [#tpu.dimension_semantics<parallel>, #tpu.dimension_semantics<arbitrary>], iteration_bounds = array<i64: 1, 1>, scalar_prefetch = 0 : i64, scratch_operands = 1 : i64, tpu.core_type = #tpu.core_type<tc>, window_params = [{transform_indices = @transform_0, window_bounds = array<i64: 8, 128>}, {transform_indices = @transform_1, window_bounds = array<i64: 8, 8>}, {transform_indices = @transform_2, window_bounds = array<i64: 8, 1>}, {transform_indices = @transform_3, window_bounds = array<i64: 8, 128>}]} {
    %c0_i32 = arith.constant 0 : i32
    %0 = arith.cmpi eq, %arg1, %c0_i32 : i32
    %1 = arith.extui %0 : i1 to i32
    %c0_i32_0 = arith.constant 0 : i32
    %2 = arith.cmpi ne, %1, %c0_i32_0 : i32
    scf.if %2 {
      %cst = arith.constant 0.000000e+00 : f32
      %77 = vector.broadcast %cst : f32 to vector<8x128xf32>
      %c0_24 = arith.constant 0 : index
      %c0_25 = arith.constant 0 : index
      %78 = vector.load %arg6[%c0_24, %c0_25] : memref<8x128xf32, #tpu.memory_space<vmem>>, vector<8x128xf32>
      tpu.vector_store %arg6[%c0_24, %c0_25], %77 {strides = array<i32>} : memref<8x128xf32, #tpu.memory_space<vmem>>, vector<8x128xf32>,
    } else {
    }
    %c0 = arith.constant 0 : index
    %c0_1 = arith.constant 0 : index
    %3 = vector.load %arg2[%c0, %c0_1] : memref<8x128xf32, #tpu.memory_space<vmem>>, vector<8x128xf32>
    %c0_2 = arith.constant 0 : index
    %c0_3 = arith.constant 0 : index
    %4 = vector.load %arg3[%c0_2, %c0_3] : memref<8x8xf32, #tpu.memory_space<vmem>>, vector<8x8xf32>
    %c0_4 = arith.constant 0 : index
    %c0_5 = arith.constant 0 : index
    %5 = vector.load %arg4[%c0_4, %c0_5] : memref<8x1xf32, #tpu.memory_space<vmem>>, vector<8x1xf32>
    %c0_6 = arith.constant 0 : index
    %c0_7 = arith.constant 0 : index
    %6 = vector.load %arg6[%c0_6, %c0_7] : memref<8x128xf32, #tpu.memory_space<vmem>>, vector<8x128xf32>
    %7 = vector.extract_strided_slice %4 {offsets = [0, 7], sizes = [8, 1], strides = [1, 1]} : vector<8x8xf32> to vector<8x1xf32>
    %8 = tpu.iota {dimensions = array<i32: 1>} : vector<8x128xi32>
    %9 = vector.broadcast %7 : vector<8x1xf32> to vector<8x128xf32>
    %10 = arith.mulf %3, %9 : vector<8x128xf32>
    %11 = vector.broadcast %5 : vector<8x1xf32> to vector<8x128xf32>
    %12 = arith.addf %10, %11 : vector<8x128xf32>
    %c1_i32 = arith.constant 1 : i32
    %13 = tpu.dynamic_rotate %3 by %c1_i32 dim 1 : vector<8x128xf32>, i32 -> vector<8x128xf32>
    %c1_i32_8 = arith.constant 1 : i32
    %14 = tpu.dynamic_rotate %6 by %c1_i32_8 dim 1 : vector<8x128xf32>, i32 -> vector<8x128xf32>
    %15 = vector.extract_strided_slice %4 {offsets = [0, 6], sizes = [8, 1], strides = [1, 1]} : vector<8x8xf32> to vector<8x1xf32>
    %c1_i32_9 = arith.constant 1 : i32
    %16 = vector.broadcast %c1_i32_9 : i32 to vector<8x128xi32>
    %17 = arith.cmpi slt, %8, %16 : vector<8x128xi32>
    %18 = arith.select %17, %14, %13 : vector<8x128xi1>, vector<8x128xf32>
    %19 = vector.broadcast %15 : vector<8x1xf32> to vector<8x128xf32>
    %20 = arith.mulf %19, %18 : vector<8x128xf32>
    %21 = arith.addf %12, %20 : vector<8x128xf32>
    %c2_i32 = arith.constant 2 : i32
    %22 = tpu.dynamic_rotate %3 by %c2_i32 dim 1 : vector<8x128xf32>, i32 -> vector<8x128xf32>
    %c2_i32_10 = arith.constant 2 : i32
    %23 = tpu.dynamic_rotate %6 by %c2_i32_10 dim 1 : vector<8x128xf32>, i32 -> vector<8x128xf32>
    %24 = vector.extract_strided_slice %4 {offsets = [0, 5], sizes = [8, 1], strides = [1, 1]} : vector<8x8xf32> to vector<8x1xf32>
    %c2_i32_11 = arith.constant 2 : i32
    %25 = vector.broadcast %c2_i32_11 : i32 to vector<8x128xi32>
    %26 = arith.cmpi slt, %8, %25 : vector<8x128xi32>
    %27 = arith.select %26, %23, %22 : vector<8x128xi1>, vector<8x128xf32>
    %28 = vector.broadcast %24 : vector<8x1xf32> to vector<8x128xf32>
    %29 = arith.mulf %28, %27 : vector<8x128xf32>
    %30 = arith.addf %21, %29 : vector<8x128xf32>
    %c3_i32 = arith.constant 3 : i32
    %31 = tpu.dynamic_rotate %3 by %c3_i32 dim 1 : vector<8x128xf32>, i32 -> vector<8x128xf32>
    %c3_i32_12 = arith.constant 3 : i32
    %32 = tpu.dynamic_rotate %6 by %c3_i32_12 dim 1 : vector<8x128xf32>, i32 -> vector<8x128xf32>
    %33 = vector.extract_strided_slice %4 {offsets = [0, 4], sizes = [8, 1], strides = [1, 1]} : vector<8x8xf32> to vector<8x1xf32>
    %c3_i32_13 = arith.constant 3 : i32
    %34 = vector.broadcast %c3_i32_13 : i32 to vector<8x128xi32>
    %35 = arith.cmpi slt, %8, %34 : vector<8x128xi32>
    %36 = arith.select %35, %32, %31 : vector<8x128xi1>, vector<8x128xf32>
    %37 = vector.broadcast %33 : vector<8x1xf32> to vector<8x128xf32>
    %38 = arith.mulf %37, %36 : vector<8x128xf32>
    %39 = arith.addf %30, %38 : vector<8x128xf32>
    %c4_i32 = arith.constant 4 : i32
    %40 = tpu.dynamic_rotate %3 by %c4_i32 dim 1 : vector<8x128xf32>, i32 -> vector<8x128xf32>
    %c4_i32_14 = arith.constant 4 : i32
    %41 = tpu.dynamic_rotate %6 by %c4_i32_14 dim 1 : vector<8x128xf32>, i32 -> vector<8x128xf32>
    %42 = vector.extract_strided_slice %4 {offsets = [0, 3], sizes = [8, 1], strides = [1, 1]} : vector<8x8xf32> to vector<8x1xf32>
    %c4_i32_15 = arith.constant 4 : i32
    %43 = vector.broadcast %c4_i32_15 : i32 to vector<8x128xi32>
    %44 = arith.cmpi slt, %8, %43 : vector<8x128xi32>
    %45 = arith.select %44, %41, %40 : vector<8x128xi1>, vector<8x128xf32>
    %46 = vector.broadcast %42 : vector<8x1xf32> to vector<8x128xf32>
    %47 = arith.mulf %46, %45 : vector<8x128xf32>
    %48 = arith.addf %39, %47 : vector<8x128xf32>
    %c5_i32 = arith.constant 5 : i32
    %49 = tpu.dynamic_rotate %3 by %c5_i32 dim 1 : vector<8x128xf32>, i32 -> vector<8x128xf32>
    %c5_i32_16 = arith.constant 5 : i32
    %50 = tpu.dynamic_rotate %6 by %c5_i32_16 dim 1 : vector<8x128xf32>, i32 -> vector<8x128xf32>
    %51 = vector.extract_strided_slice %4 {offsets = [0, 2], sizes = [8, 1], strides = [1, 1]} : vector<8x8xf32> to vector<8x1xf32>
    %c5_i32_17 = arith.constant 5 : i32
    %52 = vector.broadcast %c5_i32_17 : i32 to vector<8x128xi32>
    %53 = arith.cmpi slt, %8, %52 : vector<8x128xi32>
    %54 = arith.select %53, %50, %49 : vector<8x128xi1>, vector<8x128xf32>
    %55 = vector.broadcast %51 : vector<8x1xf32> to vector<8x128xf32>
    %56 = arith.mulf %55, %54 : vector<8x128xf32>
    %57 = arith.addf %48, %56 : vector<8x128xf32>
    %c6_i32 = arith.constant 6 : i32
    %58 = tpu.dynamic_rotate %3 by %c6_i32 dim 1 : vector<8x128xf32>, i32 -> vector<8x128xf32>
    %c6_i32_18 = arith.constant 6 : i32
    %59 = tpu.dynamic_rotate %6 by %c6_i32_18 dim 1 : vector<8x128xf32>, i32 -> vector<8x128xf32>
    %60 = vector.extract_strided_slice %4 {offsets = [0, 1], sizes = [8, 1], strides = [1, 1]} : vector<8x8xf32> to vector<8x1xf32>
    %c6_i32_19 = arith.constant 6 : i32
    %61 = vector.broadcast %c6_i32_19 : i32 to vector<8x128xi32>
    %62 = arith.cmpi slt, %8, %61 : vector<8x128xi32>
    %63 = arith.select %62, %59, %58 : vector<8x128xi1>, vector<8x128xf32>
    %64 = vector.broadcast %60 : vector<8x1xf32> to vector<8x128xf32>
    %65 = arith.mulf %64, %63 : vector<8x128xf32>
    %66 = arith.addf %57, %65 : vector<8x128xf32>
    %c7_i32 = arith.constant 7 : i32
    %67 = tpu.dynamic_rotate %3 by %c7_i32 dim 1 : vector<8x128xf32>, i32 -> vector<8x128xf32>
    %c7_i32_20 = arith.constant 7 : i32
    %68 = tpu.dynamic_rotate %6 by %c7_i32_20 dim 1 : vector<8x128xf32>, i32 -> vector<8x128xf32>
    %69 = vector.extract_strided_slice %4 {offsets = [0, 0], sizes = [8, 1], strides = [1, 1]} : vector<8x8xf32> to vector<8x1xf32>
    %c7_i32_21 = arith.constant 7 : i32
    %70 = vector.broadcast %c7_i32_21 : i32 to vector<8x128xi32>
    %71 = arith.cmpi slt, %8, %70 : vector<8x128xi32>
    %72 = arith.select %71, %68, %67 : vector<8x128xi1>, vector<8x128xf32>
    %73 = vector.broadcast %69 : vector<8x1xf32> to vector<8x128xf32>
    %74 = arith.mulf %73, %72 : vector<8x128xf32>
    %75 = arith.addf %66, %74 : vector<8x128xf32>
    %c0_22 = arith.constant 0 : index
    %c0_23 = arith.constant 0 : index
    %76 = vector.load %arg5[%c0_22, %c0_23] : memref<8x128xf32, #tpu.memory_space<vmem>>, vector<8x128xf32>
    tpu.vector_store %arg5[%c0_22, %c0_23], %75 {strides = array<i32>} : memref<8x128xf32, #tpu.memory_space<vmem>>, vector<8x128xf32>,
    return
  }
  func.func @transform_0(%arg0: i32, %arg1: i32) -> (i32, i32) {
    %c0_i32 = arith.constant 0 : i32
    return %arg0, %arg1 : i32, i32
  }
  func.func @transform_1(%arg0: i32, %arg1: i32) -> (i32, i32) {
    %c0_i32 = arith.constant 0 : i32
    %c0_i32_0 = arith.constant 0 : i32
    return %arg0, %c0_i32 : i32, i32
  }
  func.func @transform_2(%arg0: i32, %arg1: i32) -> (i32, i32) {
    %c0_i32 = arith.constant 0 : i32
    %c0_i32_0 = arith.constant 0 : i32
    return %arg0, %c0_i32 : i32, i32
  }
  func.func @transform_3(%arg0: i32, %arg1: i32) -> (i32, i32) {
    %c0_i32 = arith.constant 0 : i32
    return %arg0, %arg1 : i32, i32
  }
}

</mosaic_0001>

<bundles_post_ra>
// kernel: tpu_custom_call.1
= control target key start
LH: loop header
LB: loop body
LE: loop exit
PB: predicated region body
PF: predicated region fallthrough
CT: control target
= control target key end

     0   :  { %8 = vsyncpa [#allocation4], 0  ;;  %s293_s0 = inlined_call_operand.vmem [shape: f32[8,128], index: 0, kind: input, shape index: {}]   ;;  %s294_s1 = inlined_call_operand.hbm [shape: f32[8,8], index: 1, kind: input, shape index: {}]   ;;  %s295_s2 = inlined_call_operand.vmem [shape: f32[8,1], index: 2, kind: input, shape index: {}]   ;;  %s296_s3 = inlined_call_operand.hbm [shape: f32[8,128], index: 3, kind: output, shape index: {}]  }
   0x1   :  { %9 = vsyncpa [#allocation5], 0  ;;  %s225_s12 = smov [#allocation3]   ;;  %s177_s16 = scalar_lea.hbm %s294_s1, 128 }
   0x2   :  { %s18_s13 = sshll.u32 %s225_s12, 4  ;;  %p178_p0 = scmp.ne.s32.totalorder %s294_s1, %s177_s16  ;;  %s19_s13 = int_to_ptr.vmem [resolvable:$true] %s18_s13 }
   0x3   :  { %p181_p1 = scmp.lt.u32.totalorder %s177_s16, %s294_s1 }
   0x5   :  { %p183_p2 = pnand %p181_p1, %p178_p0 }
   0x7   :  { %186 = shalt.err (!%p183_p2)
}
   0x8   :  { %s187_s21 = scalar_lea.vmem %s19_s13, 128  ;;  %p192_p4 = scmp.lt.s32.totalorder %s19_s13, %s19_s13 }
   0x9   :  { %p188_p3 = scmp.ne.s32.totalorder %s19_s13, %s187_s21  ;;  %p193_p5 = scmp.lt.s32.totalorder %s187_s21, %s187_s21 }
   0xb   :  { %p194_p6 = por %p193_p5, %p192_p4 }
   0xd   :  { %p195_p7 = pnand %p194_p6, %p188_p3 }
   0xf   :  { %198 = shalt.err (!%p195_p7)
}
  0x10   :  { %21 = dma.hbm_to_vmem [thread:$0]  %s294_s1, 128, %s19_s13, [#allocation4]  }
  0x11   :  { %221 = dma.done.wait [#allocation4], 128  }
  0x12   :  { %222 = vsyncadd [#allocation4], 4294967168  ;;  %v226_v0 = vmov 6   ;;  %v227_v1 = vmov 7   ;;  %v33_v2 = vld [vmem:[#allocation3] sm:$0xff]  ;;  %v228_v4 = vmov 5   ;;  %v36_v23 = vlaneseq }
  0x13   :  { %170 = vset.pattern.permute.xlu1 %v226_v0  ;;  %168 = vset.pattern.permute.xlu0 %v227_v1  ;;  %v34_v3 = vld [vmem:[%s295_s2] sm:$0xff]  ;;  %v229_v5 = vmov 0   ;;  %v230_v7 = vmov 4   ;;  %s231_s27 = smov 1   ;;  %v232_v8 = vmov 3   ;;  %v233_v9 = vmov 0.0  }
  0x14   :  { %57 = vperm.xlu1 %170, %v33_v2   ;;  %40 = vperm.xlu0 %168, %v33_v2   ;;  %v32_v6 = vld [vmem:[%s293_s0] sm:$0xff]  ;;  %v234_v10 = vmov 2   ;;  %s235_s2 = smov 2   ;;  %v236_v11 = vmov 1   ;;  %s237_s0 = smov 3   ;;  %v37_v26 = vand.u32 127, %v36_v23 }
  0x15   :  { %s238_s28 = smov 6   ;;  %s239_s29 = smov 4  }
  0x16   :  { %s240_s30 = smov 7   ;;  %s241_s4 = smov 5   ;;  %vm54_vm0 = vcmp.lt.s32.totalorder %v37_v26, 1  ;;  %vm66_vm1 = vcmp.lt.s32.totalorder %v37_v26, 2  ;;  %vm78_vm2 = vcmp.lt.s32.totalorder %v37_v26, 3  ;;  %vm90_vm3 = vcmp.lt.s32.totalorder %v37_v26, 4 }
  0x17   :  { %vm102_vm4 = vcmp.lt.s32.totalorder %v37_v26, 5  ;;  %vm114_vm5 = vcmp.lt.s32.totalorder %v37_v26, 6  ;;  %vm126_vm6 = vcmp.lt.s32.totalorder %v37_v26, 7  ;;  %s242_s5 = smov [#allocation6]  }
  0x18   :  { %171 = vset.pattern.permute.xlu1 %v228_v4  ;;  %169 = vset.pattern.permute.xlu0 %v229_v5  ;;  %s141_s6 = sshll.u32 %s242_s5, 4  ;;  %s142_s6 = int_to_ptr.vmem [resolvable:$true] %s141_s6 }
  0x19   :  { %69 = vperm.xlu1 %171, %v33_v2   ;;  %46 = vperm.xlu0 %169, %v34_v3   ;;  %s199_s7 = scalar_lea.vmem %s142_s6, 128  ;;  %p204_p9 = scmp.lt.s32.totalorder %s142_s6, %s142_s6 }
  0x1a   :  { %p200_p8 = scmp.ne.s32.totalorder %s142_s6, %s199_s7  ;;  %p205_p10 = scmp.lt.s32.totalorder %s199_s7, %s199_s7 }
  0x1c   :  { %p206_p11 = por %p205_p10, %p204_p9 }
  0x1d   :  { %172 = vset.pattern.permute.xlu1 %v230_v7  ;;  %50 = vrot.lane.b32.xlu0 %v32_v6, %s231_s27 }
  0x1e   :  { %81 = vperm.xlu1 %172, %v33_v2   ;;  %173 = vset.pattern.permute.xlu0 %v232_v8  ;;  %p207_p12 = pnand %p206_p11, %p200_p8 }
  0x21   :  { %93 = vperm.xlu0 %173, %v33_v2  }
  0x22   :  { %52 = vrot.lane.b32.xlu1 %v233_v9, %s231_s27 }
  0x25   :  { %174 = vset.pattern.permute.xlu0 %v234_v10 }
  0x26   :  { %62 = vrot.lane.b32.xlu1 %v32_v6, %s235_s2  ;;  %105 = vperm.xlu0 %174, %v33_v2  }
  0x2a   :  { %64 = vrot.lane.b32.xlu1 %v233_v9, %s235_s2  ;;  %175 = vset.pattern.permute.xlu0 %v236_v11 }
  0x2b   :  { %117 = vperm.xlu0 %175, %v33_v2  }
  0x2e   :  { %74 = vrot.lane.b32.xlu1 %v32_v6, %s237_s0 }
  0x2f   :  { %176 = vset.pattern.permute.xlu0 %v229_v5 }
  0x30   :  { %129 = vperm.xlu0 %176, %v33_v2  }
  0x32   :  { %76 = vrot.lane.b32.xlu1 %v233_v9, %s237_s0 }
  0x34   :  { %110 = vrot.lane.b32.xlu0 %v32_v6, %s238_s28 }
  0x36   :  { %86 = vrot.lane.b32.xlu1 %v32_v6, %s239_s29 }
  0x38   :  { %122 = vrot.lane.b32.xlu0 %v32_v6, %s240_s30 }
  0x3a   :  { %88 = vrot.lane.b32.xlu1 %v233_v9, %s239_s29 }
  0x3e   :  { %98 = vrot.lane.b32.xlu1 %v32_v6, %s241_s4 }
  0x42   :  { %100 = vrot.lane.b32.xlu1 %v233_v9, %s241_s4 }
  0x46   :  { %112 = vrot.lane.b32.xlu1 %v233_v9, %s238_s28 }
  0x4a   :  { %124 = vrot.lane.b32.xlu1 %v233_v9, %s240_s30 }
  0x93   :  { %v58_v12 = vpop.permute.xlu1 %57  ;;  %v41_v14 = vpop.permute.xlu0 %40 }
  0x94   :  { %v43_v29 = vmul.f32 %v41_v14, %v32_v6 }
  0x98   :  { %v70_v13 = vpop.permute.xlu1 %69  ;;  %v47_v16 = vpop.permute.xlu0 %46 }
  0x99   :  { %v49_v34 = vadd.f32 %v47_v16, %v43_v29 }
  0x9c   :  { %v51_v18 = vpop.permute.xlu0 %50 }
  0x9d   :  { %v82_v15 = vpop.permute.xlu1 %81 }
  0xa0   :  { %v94_v21 = vpop.permute.xlu0 %93 }
  0xa1   :  { %v53_v17 = vpop.permute.xlu1 %52 }
  0xa2   :  { %v55_v31 = vsel %vm54_vm0, %v53_v17, %v51_v18 }
  0xa3   :  { %v60_v35 = vmul.f32 %v58_v12, %v55_v31 }
  0xa5   :  { %v63_v19 = vpop.permute.xlu1 %62  ;;  %v106_v24 = vpop.permute.xlu0 %105  ;;  %v61_v40 = vadd.f32 %v60_v35, %v49_v34 }
  0xa9   :  { %v65_v20 = vpop.permute.xlu1 %64 }
  0xaa   :  { %v118_v28 = vpop.permute.xlu0 %117  ;;  %v67_v33 = vsel %vm66_vm1, %v65_v20, %v63_v19 }
  0xab   :  { %v72_v38 = vmul.f32 %v70_v13, %v67_v33 }
  0xad   :  { %v75_v22 = vpop.permute.xlu1 %74  ;;  %v73_v45 = vadd.f32 %v72_v38, %v61_v40 }
  0xaf   :  { %v130_v32 = vpop.permute.xlu0 %129 }
  0xb1   :  { %v77_v25 = vpop.permute.xlu1 %76 }
  0xb2   :  { %v79_v37 = vsel %vm78_vm2, %v77_v25, %v75_v22 }
  0xb3   :  { %v84_v41 = vmul.f32 %v82_v15, %v79_v37  ;;  %v111_v43 = vpop.permute.xlu0 %110 }
  0xb5   :  { %v87_v27 = vpop.permute.xlu1 %86  ;;  %v85_v47 = vadd.f32 %v84_v41, %v73_v45 }
  0xb7   :  { %v123_v53 = vpop.permute.xlu0 %122 }
  0xb9   :  { %v89_v30 = vpop.permute.xlu1 %88 }
  0xba   :  { %v91_v39 = vsel %vm90_vm3, %v89_v30, %v87_v27 }
  0xbb   :  { %v96_v46 = vmul.f32 %v94_v21, %v91_v39 }
  0xbd   :  { %v99_v36 = vpop.permute.xlu1 %98  ;;  %v97_v51 = vadd.f32 %v96_v46, %v85_v47 }
  0xc1   :  { %v101_v42 = vpop.permute.xlu1 %100 }
  0xc2   :  { %v103_v44 = vsel %vm102_vm4, %v101_v42, %v99_v36 }
  0xc3   :  { %v108_v48 = vmul.f32 %v106_v24, %v103_v44 }
  0xc5   :  { %v113_v49 = vpop.permute.xlu1 %112  ;;  %v109_v54 = vadd.f32 %v108_v48, %v97_v51 }
  0xc6   :  { %v115_v50 = vsel %vm114_vm5, %v113_v49, %v111_v43 }
  0xc7   :  { %v120_v52 = vmul.f32 %v118_v28, %v115_v50 }
  0xc9   :  { %v125_v55 = vpop.permute.xlu1 %124  ;;  %v121_v57 = vadd.f32 %v120_v52, %v109_v54 }
  0xca   :  { %v127_v56 = vsel %vm126_vm6, %v125_v55, %v123_v53 }
  0xcb   :  { %v132_v58 = vmul.f32 %v130_v32, %v127_v56 }
  0xcd   :  { %v133_v59 = vadd.f32 %v132_v58, %v121_v57 }
  0xcf   :  { %134 = vst [vmem:[#allocation6] sm:$0xff] %v133_v59 }
  0xd0   :  { %210 = shalt.err (!%p207_p12)
}
  0xd1   :  { %s211_s10 = scalar_lea.hbm %s296_s3, 128 }
  0xd2   :  { %p212_p13 = scmp.ne.s32.totalorder %s296_s3, %s211_s10  ;;  %p215_p0 = scmp.lt.u32.totalorder %s211_s10, %s296_s3 }
  0xd4   :  { %p217_p1 = pnand %p215_p0, %p212_p13 }
  0xd6   :  { %220 = shalt.err (!%p217_p1)
}
  0xd7   :  { %144 = dma.vmem_to_hbm [thread:$0]  %s142_s6, 128, %s296_s3, [#allocation5]  }
  0xd8   :  { %223 = dma.done.wait [#allocation5], 128  }
  0xd9   :  { %224 = vsyncadd [#allocation5], 4294967168 }
  0xda   :  { %148 = vsyncpa [#allocation4], 1 }
  0xdb   :  { %149 = vsyncpa [#allocation5], 1 }

</bundles_post_ra>
